<compile_context>
chip_gen: v5e
topology: v5e:2x2
jax: 0.10.0
libtpu: 0.0.40
codegen_flags: <defaults>
</compile_context>

<pallas_src>
import functools

import jax
import jax.numpy as jnp
from jax import lax
from jax.experimental import pallas as pl
from jax.experimental.pallas import tpu as pltpu

BN_EPS = 1e-5
_LANE = 128


def _round_up(x, m):
    return (x + m - 1) // m * m


@functools.lru_cache(maxsize=None)
def _hw_config():
    """(preferred feature tile, vmem_limit_bytes, require_even_feature_tiles)."""
    try:
        kind = jax.devices()[0].device_kind.lower()
    except Exception:  # pragma: no cover - defensive
        kind = ""
    if "v5" in kind:   # v5e: 4x128^2 MXU, 128 MiB VMEM, 1 TC
        return 128, 96 * 1024 * 1024, False
    if "v6" in kind:   # v6e: 2x256^2 MXU, 128 MiB VMEM, 1 TC
        return 256, 96 * 1024 * 1024, False
    if "v7" in kind:   # v7x: 2x256^2 MXU, 64 MiB VMEM per TC, 2 TCs
        return 256, 48 * 1024 * 1024, True
    # Unknown generation: conservative (v7x-like) budget.
    return 256, 48 * 1024 * 1024, True


def _pick_tn(out_planes, tn_pref, require_even_tiles):
    """Lane-dense feature tile width."""
    if tn_pref > _LANE and out_planes > _LANE:
        m_pad = _round_up(out_planes, tn_pref)
        tiles = m_pad // tn_pref
        # On v7x the single "parallel" feature axis is sharded across 2 TCs:
        # keep the tile count even (and >= 2) so neither core goes idle.
        if (not require_even_tiles) or (tiles >= 2 and tiles % 2 == 0):
            return tn_pref
    return _LANE


def _pick_tk(n, kp, tn, vmem_limit):
    """K-reduction tile. kp is already a multiple of 128."""
    budget = int(vmem_limit * 0.85)
    fixed = 3 * n * tn * 4  # f32 accumulator + double-buffered f32 output tile
    # Fast path: whole K resident (x single-buffered, weight tile double-buffered).
    if n * kp * 2 + 2 * tn * kp * 2 + fixed <= budget:
        return kp
    # Streaming path: lane-aligned K chunks, x and weight double-buffered.
    # TODO(synk): very large batches additionally need an N-tile grid axis with
    # two-pass BN statistics; here the batch stays resident per feature tile.
    tk = min(kp, 2048)
    while tk > _LANE and (2 * n * tk * 2 + 2 * tn * tk * 2 + fixed > budget
                          or kp % tk != 0):
        tk -= _LANE
    return max(tk, _LANE)


def _linear_bn_relu_kernel(x_ref, w_ref, gamma_ref, beta_ref, o_ref, acc_ref,
                           *, inv_n):
    k = pl.program_id(1)

    @pl.when(k == 0)
    def _init():
        acc_ref[...] = jnp.zeros_like(acc_ref)

    # MXU: (N, TK) @ (TK, TN). Weight is pre-laid-out as (K, out), so the
    # contraction is (((1,), (0,)), ((), ())) and no in-kernel transpose is
    # needed (vxpose would contend with vmatmul for vector-extended slots).
    acc_ref[...] += jnp.dot(x_ref[...], w_ref[...],
                            preferred_element_type=jnp.float32)

    @pl.when(k == pl.num_programs(1) - 1)
    def _epilogue():
        y = acc_ref[...]                                      # (N, TN) f32
        # BatchNorm1d training-mode batch stats, centered form (same numerics
        # as the reference; no E[y^2]-mean^2 cancellation). The nn.Linear bias
        # never enters: the mean subtraction cancels it exactly.
        mean = jnp.sum(y, axis=0, keepdims=True) * inv_n      # (1, TN)
        d = y - mean
        var = jnp.sum(d * d, axis=0, keepdims=True) * inv_n   # biased variance
        scale = gamma_ref[...] * lax.rsqrt(var + BN_EPS)      # (1, TN)
        # Folded BN affine + ReLU on the centered residual; lane-dense store.
        o_ref[...] = jnp.maximum(d * scale + beta_ref[...], 0.0).astype(o_ref.dtype)


def prepare_linear_bn_relu_params(weight, bias=None, gamma=None, beta=None,
                                  *, matmul_dtype=jnp.bfloat16):
    """One-time parameter prep (hoisted out of the per-call hot path).

    weight: (out_planes, in_planes) in PyTorch nn.Linear layout.
    bias:   accepted for API parity but unused -- training-mode BatchNorm's
            mean subtraction cancels a per-feature constant bias exactly.
    gamma/beta: BatchNorm1d affine params (default 1 / 0, fresh module init).
    """
    out_planes, k_dim = weight.shape
    tn_pref, vmem_limit, even_tiles = _hw_config()
    tn = _pick_tn(out_planes, tn_pref, even_tiles)
    m_pad = _round_up(out_planes, tn)
    k_pad = _round_up(k_dim, _LANE)

    if gamma is None:
        gamma = jnp.ones((out_planes,), jnp.float32)
    if beta is None:
        beta = jnp.zeros((out_planes,), jnp.float32)
    del bias  # cancelled exactly by training-mode BatchNorm mean subtraction

    # Weight cached in MXU-native (K, out) layout, padded + cast once.
    w_kn = jnp.pad(weight, ((0, m_pad - out_planes), (0, k_pad - k_dim)))
    w_kn = jnp.transpose(w_kn).astype(matmul_dtype)           # (Kp, Mp)
    # Padded feature columns: gamma = 0 and beta = 0 -> scale = 0 -> output is
    # exactly 0 regardless of what the padded matmul columns compute.
    g = jnp.pad(gamma.astype(jnp.float32), (0, m_pad - out_planes)).reshape(1, m_pad)
    b = jnp.pad(beta.astype(jnp.float32), (0, m_pad - out_planes)).reshape(1, m_pad)

    return dict(w_kn=w_kn, gamma=g, beta=b, out_planes=out_planes, k_dim=k_dim,
                tn=tn, vmem_limit=vmem_limit, matmul_dtype=matmul_dtype)


def linear_bn_relu(x, params, *, out_dtype=jnp.float32):
    """Fused Linear -> BatchNorm1d (training-mode batch stats) -> ReLU.

    x: (N, in_planes) float32. `params` comes from prepare_linear_bn_relu_params.
    out_dtype=jnp.bfloat16 halves output HBM writeback (gate on accuracy needs).
    """
    n, k_dim = x.shape
    assert k_dim == params["k_dim"], (x.shape, params["k_dim"])
    w = params["w_kn"]
    kp, m_pad = w.shape
    tn = params["tn"]
    vmem_limit = params["vmem_limit"]

    tk = _pick_tk(n, kp, tn, vmem_limit)
    k_tiles = kp // tk
    m_tiles = m_pad // tn

    x_p = x if kp == k_dim else jnp.pad(x, ((0, 0), (0, kp - k_dim)))
    x_p = x_p.astype(params["matmul_dtype"])

    kernel = functools.partial(_linear_bn_relu_kernel, inv_n=1.0 / n)

    def run(single_buffer_x):
        x_kwargs = {"pipeline_mode": pl.Buffered(1)} if single_buffer_x else {}
        return pl.pallas_call(
            kernel,
            out_shape=jax.ShapeDtypeStruct((n, m_pad), out_dtype),
            grid_spec=pltpu.PrefetchScalarGridSpec(
                num_scalar_prefetch=0,
                grid=(m_tiles, k_tiles),
                in_specs=[
                    pl.BlockSpec((n, tk), lambda j, k: (0, k), **x_kwargs),
                    pl.BlockSpec((tk, tn), lambda j, k: (k, j)),  # weight (K, out) tile
                    pl.BlockSpec((1, tn), lambda j, k: (0, j)),   # gamma tile
                    pl.BlockSpec((1, tn), lambda j, k: (0, j)),   # beta tile
                ],
                out_specs=pl.BlockSpec((n, tn), lambda j, k: (0, j)),
                scratch_shapes=[pltpu.VMEM((n, tn), jnp.float32)],  # f32 accumulator
            ),
            compiler_params=pltpu.CompilerParams(
                # Feature tiles independent -> shard across v7x's 2 TCs;
                # K axis is a reduction -> arbitrary.
                dimension_semantics=("parallel", "arbitrary"),
                vmem_limit_bytes=vmem_limit,
            ),
        )(x_p, w, params["gamma"], params["beta"])

    if k_tiles == 1:
        # x's block index never changes across the grid: single-buffer it so a
        # second N*K VMEM copy (which could never overlap anything) is not kept.
        try:
            out = run(single_buffer_x=True)
        except Exception:
            # pipeline_mode=Buffered(1) not supported on this jax/libtpu combo:
            # fall back to the default (double-buffered, still correct) pipeline.
            out = run(single_buffer_x=False)
    else:
        out = run(single_buffer_x=False)

    return out[:, :params["out_planes"]]


def _reference(x, weight, bias, gamma, beta, matmul_dtype):
    # Exact module semantics (Linear bias included, training-mode BN stats),
    # with matmul operands cast like the kernel's MXU inputs.
    y = jnp.dot(x.astype(matmul_dtype), weight.astype(matmul_dtype).T,
                preferred_element_type=jnp.float32)
    if bias is not None:
        y = y + bias
    mean = y.mean(axis=0, keepdims=True)
    var = ((y - mean) ** 2).mean(axis=0, keepdims=True)
    return jnp.maximum(gamma * (y - mean) / jnp.sqrt(var + BN_EPS) + beta, 0.0)


if __name__ == "__main__":
    key = jax.random.PRNGKey(0)

    def make_case(case_key, batch, in_planes, out_planes):
        k_x, k_w, k_b = jax.random.split(case_key, 3)
        bound = 1.0 / (in_planes ** 0.5)
        weight = jax.random.uniform(
            k_w, (out_planes, in_planes), jnp.float32, -bound, bound)
        bias = jax.random.uniform(k_b, (out_planes,), jnp.float32, -bound, bound)
        gamma = jnp.ones((out_planes,), jnp.float32)   # BN weight init
        beta = jnp.zeros((out_planes,), jnp.float32)   # BN bias init
        x = jax.random.normal(k_x, (batch, in_planes), jnp.float32)
        return x, weight, bias, gamma, beta

    k1, k2 = jax.random.split(key)
    cases = [
        ("aligned", make_case(k1, 16, 128, 256)),  # K and out_planes 128-aligned
        ("padded", make_case(k2, 16, 96, 200)),    # exercises K and feature padding
    ]
    for name, (x, weight, bias, gamma, beta) in cases:
        params = prepare_linear_bn_relu_params(weight, bias, gamma, beta)
        out = jax.block_until_ready(linear_bn_relu(x, params))
        ref = _reference(x, weight, bias, gamma, beta, jnp.bfloat16)
        assert out.shape == ref.shape, (name, out.shape, ref.shape)
        assert jnp.allclose(out, ref, atol=2e-3, rtol=2e-3), (
            f"{name}: mismatch vs reference")

    print("KERNEL_OK")
</pallas_src>

<mosaic_0001>
module attributes {stable_mosaic.version = 11 : i64} {
  func.func @_linear_bn_relu_kernel(%arg0: i32, %arg1: i32, %arg2: memref<16x128xbf16, #tpu.memory_space<vmem>>, %arg3: memref<128x128xbf16, #tpu.memory_space<vmem>>, %arg4: memref<1x128xf32, #tpu.memory_space<vmem>>, %arg5: memref<1x128xf32, #tpu.memory_space<vmem>>, %arg6: memref<16x128xf32, #tpu.memory_space<vmem>>, %arg7: memref<16x128xf32, #tpu.memory_space<vmem>>) attributes {dimension_semantics = [#tpu.dimension_semantics<parallel>, #tpu.dimension_semantics<arbitrary>], iteration_bounds = array<i64: 2, 1>, scalar_prefetch = 0 : i64, scratch_operands = 1 : i64, tpu.core_type = #tpu.core_type<tc>, window_params = [{pipeline_mode = #tpu.pipeline_mode<synchronous>, transform_indices = @transform_0, window_bounds = array<i64: 16, 128>}, {transform_indices = @transform_1, window_bounds = array<i64: 128, 128>}, {transform_indices = @transform_2, window_bounds = array<i64: 1, 128>}, {transform_indices = @transform_3, window_bounds = array<i64: 1, 128>}, {transform_indices = @transform_4, window_bounds = array<i64: 16, 128>}]} {
    %c0_i32 = arith.constant 0 : i32
    %0 = arith.cmpi eq, %arg1, %c0_i32 : i32
    %1 = arith.extui %0 : i1 to i32
    %c0_i32_0 = arith.constant 0 : i32
    %2 = arith.cmpi ne, %1, %c0_i32_0 : i32
    scf.if %2 {
      %cst_10 = arith.constant 0.000000e+00 : f32
      %12 = vector.broadcast %cst_10 : f32 to vector<16x128xf32>
      %c0_11 = arith.constant 0 : index
      %c0_12 = arith.constant 0 : index
      %13 = vector.load %arg7[%c0_11, %c0_12] : memref<16x128xf32, #tpu.memory_space<vmem>>, vector<16x128xf32>
      tpu.vector_store %arg7[%c0_11, %c0_12], %12 {strides = array<i32>} : memref<16x128xf32, #tpu.memory_space<vmem>>, vector<16x128xf32>,
    } else {
    }
    %c0 = arith.constant 0 : index
    %c0_1 = arith.constant 0 : index
    %3 = vector.load %arg7[%c0, %c0_1] : memref<16x128xf32, #tpu.memory_space<vmem>>, vector<16x128xf32>
    %c0_2 = arith.constant 0 : index
    %c0_3 = arith.constant 0 : index
    %4 = vector.load %arg2[%c0_2, %c0_3] : memref<16x128xbf16, #tpu.memory_space<vmem>>, vector<16x128xbf16>
    %c0_4 = arith.constant 0 : index
    %c0_5 = arith.constant 0 : index
    %5 = vector.load %arg3[%c0_4, %c0_5] : memref<128x128xbf16, #tpu.memory_space<vmem>>, vector<128x128xbf16>
    %cst = arith.constant dense<0.000000e+00> : vector<16x128xf32>
    %6 = tpu.matmul %4, %5, %cst {dimension_numbers = #tpu.dot_dimension_numbers<[1], [0], [0], [1], [0, 0, 1, 1], [], []>} : vector<16x128xbf16>, vector<128x128xbf16>, vector<16x128xf32> -> vector<16x128xf32>
    %7 = arith.addf %3, %6 : vector<16x128xf32>
    %c0_6 = arith.constant 0 : index
    %c0_7 = arith.constant 0 : index
    %8 = vector.load %arg7[%c0_6, %c0_7] : memref<16x128xf32, #tpu.memory_space<vmem>>, vector<16x128xf32>
    tpu.vector_store %arg7[%c0_6, %c0_7], %7 {strides = array<i32>} : memref<16x128xf32, #tpu.memory_space<vmem>>, vector<16x128xf32>,
    %c0_i32_8 = arith.constant 0 : i32
    %9 = arith.cmpi eq, %arg1, %c0_i32_8 : i32
    %10 = arith.extui %9 : i1 to i32
    %c0_i32_9 = arith.constant 0 : i32
    %11 = arith.cmpi ne, %10, %c0_i32_9 : i32
    scf.if %11 {
      %c0_10 = arith.constant 0 : index
      %c0_11 = arith.constant 0 : index
      %12 = vector.load %arg7[%c0_10, %c0_11] : memref<16x128xf32, #tpu.memory_space<vmem>>, vector<16x128xf32>
      %cst_12 = arith.constant dense<0.000000e+00> : vector<128xf32>
      %13 = vector.multi_reduction <add>, %12, %cst_12 [0] : vector<16x128xf32> to vector<128xf32>
      %14 = vector.shape_cast %13 : vector<128xf32> to vector<1x128xf32>
      %cst_13 = arith.constant 6.250000e-02 : f32
      %15 = vector.broadcast %cst_13 : f32 to vector<1x128xf32>
      %16 = arith.mulf %14, %15 : vector<1x128xf32>
      %17 = vector.broadcast %16 : vector<1x128xf32> to vector<16x128xf32>
      %18 = arith.subf %12, %17 : vector<16x128xf32>
      %19 = arith.mulf %18, %18 : vector<16x128xf32>
      %cst_14 = arith.constant dense<0.000000e+00> : vector<128xf32>
      %20 = vector.multi_reduction <add>, %19, %cst_14 [0] : vector<16x128xf32> to vector<128xf32>
      %21 = vector.shape_cast %20 : vector<128xf32> to vector<1x128xf32>
      %cst_15 = arith.constant 6.250000e-02 : f32
      %22 = vector.broadcast %cst_15 : f32 to vector<1x128xf32>
      %23 = arith.mulf %21, %22 : vector<1x128xf32>
      %c0_16 = arith.constant 0 : index
      %c0_17 = arith.constant 0 : index
      %24 = vector.load %arg4[%c0_16, %c0_17] : memref<1x128xf32, #tpu.memory_space<vmem>>, vector<1x128xf32>
      %cst_18 = arith.constant 9.99999974E-6 : f32
      %25 = vector.broadcast %cst_18 : f32 to vector<1x128xf32>
      %26 = arith.addf %23, %25 : vector<1x128xf32>
      %27 = math.rsqrt %26 : vector<1x128xf32>
      %28 = arith.mulf %24, %27 : vector<1x128xf32>
      %29 = vector.broadcast %28 : vector<1x128xf32> to vector<16x128xf32>
      %30 = arith.mulf %18, %29 : vector<16x128xf32>
      %c0_19 = arith.constant 0 : index
      %c0_20 = arith.constant 0 : index
      %31 = vector.load %arg5[%c0_19, %c0_20] : memref<1x128xf32, #tpu.memory_space<vmem>>, vector<1x128xf32>
      %32 = vector.broadcast %31 : vector<1x128xf32> to vector<16x128xf32>
      %33 = arith.addf %30, %32 : vector<16x128xf32>
      %cst_21 = arith.constant 0.000000e+00 : f32
      %34 = vector.broadcast %cst_21 : f32 to vector<16x128xf32>
      %35 = arith.maximumf %33, %34 : vector<16x128xf32>
      %c0_22 = arith.constant 0 : index
      %c0_23 = arith.constant 0 : index
      %36 = vector.load %arg6[%c0_22, %c0_23] : memref<16x128xf32, #tpu.memory_space<vmem>>, vector<16x128xf32>
      tpu.vector_store %arg6[%c0_22, %c0_23], %35 {strides = array<i32>} : memref<16x128xf32, #tpu.memory_space<vmem>>, vector<16x128xf32>,
    } else {
    }
    return
  }
  func.func @transform_0(%arg0: i32, %arg1: i32) -> (i32, i32) {
    %c0_i32 = arith.constant 0 : i32
    %c0_i32_0 = arith.constant 0 : i32
    return %c0_i32, %arg1 : i32, i32
  }
  func.func @transform_1(%arg0: i32, %arg1: i32) -> (i32, i32) {
    %c0_i32 = arith.constant 0 : i32
    return %arg1, %arg0 : i32, i32
  }
  func.func @transform_2(%arg0: i32, %arg1: i32) -> (i32, i32) {
    %c0_i32 = arith.constant 0 : i32
    %c0_i32_0 = arith.constant 0 : i32
    return %c0_i32, %arg0 : i32, i32
  }
  func.func @transform_3(%arg0: i32, %arg1: i32) -> (i32, i32) {
    %c0_i32 = arith.constant 0 : i32
    %c0_i32_0 = arith.constant 0 : i32
    return %c0_i32, %arg0 : i32, i32
  }
  func.func @transform_4(%arg0: i32, %arg1: i32) -> (i32, i32) {
    %c0_i32 = arith.constant 0 : i32
    %c0_i32_0 = arith.constant 0 : i32
    return %c0_i32, %arg0 : i32, i32
  }
}

module attributes {stable_mosaic.version = 11 : i64} {
  func.func @_linear_bn_relu_kernel(%arg0: i32, %arg1: i32, %arg2: memref<16x128xbf16, #tpu.memory_space<vmem>>, %arg3: memref<128x128xbf16, #tpu.memory_space<vmem>>, %arg4: memref<1x128xf32, #tpu.memory_space<vmem>>, %arg5: memref<1x128xf32, #tpu.memory_space<vmem>>, %arg6: memref<16x128xf32, #tpu.memory_space<vmem>>, %arg7: memref<16x128xf32, #tpu.memory_space<vmem>>) attributes {dimension_semantics = [#tpu.dimension_semantics<parallel>, #tpu.dimension_semantics<arbitrary>], iteration_bounds = array<i64: 2, 1>, scalar_prefetch = 0 : i64, scratch_operands = 1 : i64, tpu.core_type = #tpu.core_type<tc>, window_params = [{transform_indices = @transform_0, window_bounds = array<i64: 16, 128>}, {transform_indices = @transform_1, window_bounds = array<i64: 128, 128>}, {transform_indices = @transform_2, window_bounds = array<i64: 1, 128>}, {transform_indices = @transform_3, window_bounds = array<i64: 1, 128>}, {transform_indices = @transform_4, window_bounds = array<i64: 16, 128>}]} {
    %c0_i32 = arith.constant 0 : i32
    %0 = arith.cmpi eq, %arg1, %c0_i32 : i32
    %1 = arith.extui %0 : i1 to i32
    %c0_i32_0 = arith.constant 0 : i32
    %2 = arith.cmpi ne, %1, %c0_i32_0 : i32
    scf.if %2 {
      %cst_10 = arith.constant 0.000000e+00 : f32
      %12 = vector.broadcast %cst_10 : f32 to vector<16x128xf32>
      %c0_11 = arith.constant 0 : index
      %c0_12 = arith.constant 0 : index
      %13 = vector.load %arg7[%c0_11, %c0_12] : memref<16x128xf32, #tpu.memory_space<vmem>>, vector<16x128xf32>
      tpu.vector_store %arg7[%c0_11, %c0_12], %12 {strides = array<i32>} : memref<16x128xf32, #tpu.memory_space<vmem>>, vector<16x128xf32>,
    } else {
    }
    %c0 = arith.constant 0 : index
    %c0_1 = arith.constant 0 : index
    %3 = vector.load %arg7[%c0, %c0_1] : memref<16x128xf32, #tpu.memory_space<vmem>>, vector<16x128xf32>
    %c0_2 = arith.constant 0 : index
    %c0_3 = arith.constant 0 : index
    %4 = vector.load %arg2[%c0_2, %c0_3] : memref<16x128xbf16, #tpu.memory_space<vmem>>, vector<16x128xbf16>
    %c0_4 = arith.constant 0 : index
    %c0_5 = arith.constant 0 : index
    %5 = vector.load %arg3[%c0_4, %c0_5] : memref<128x128xbf16, #tpu.memory_space<vmem>>, vector<128x128xbf16>
    %cst = arith.constant dense<0.000000e+00> : vector<16x128xf32>
    %6 = tpu.matmul %4, %5, %cst {dimension_numbers = #tpu.dot_dimension_numbers<[1], [0], [0], [1], [0, 0, 1, 1], [], []>} : vector<16x128xbf16>, vector<128x128xbf16>, vector<16x128xf32> -> vector<16x128xf32>
    %7 = arith.addf %3, %6 : vector<16x128xf32>
    %c0_6 = arith.constant 0 : index
    %c0_7 = arith.constant 0 : index
    %8 = vector.load %arg7[%c0_6, %c0_7] : memref<16x128xf32, #tpu.memory_space<vmem>>, vector<16x128xf32>
    tpu.vector_store %arg7[%c0_6, %c0_7], %7 {strides = array<i32>} : memref<16x128xf32, #tpu.memory_space<vmem>>, vector<16x128xf32>,
    %c0_i32_8 = arith.constant 0 : i32
    %9 = arith.cmpi eq, %arg1, %c0_i32_8 : i32
    %10 = arith.extui %9 : i1 to i32
    %c0_i32_9 = arith.constant 0 : i32
    %11 = arith.cmpi ne, %10, %c0_i32_9 : i32
    scf.if %11 {
      %c0_10 = arith.constant 0 : index
      %c0_11 = arith.constant 0 : index
      %12 = vector.load %arg7[%c0_10, %c0_11] : memref<16x128xf32, #tpu.memory_space<vmem>>, vector<16x128xf32>
      %cst_12 = arith.constant dense<0.000000e+00> : vector<128xf32>
      %13 = vector.multi_reduction <add>, %12, %cst_12 [0] : vector<16x128xf32> to vector<128xf32>
      %14 = vector.shape_cast %13 : vector<128xf32> to vector<1x128xf32>
      %cst_13 = arith.constant 6.250000e-02 : f32
      %15 = vector.broadcast %cst_13 : f32 to vector<1x128xf32>
      %16 = arith.mulf %14, %15 : vector<1x128xf32>
      %17 = vector.broadcast %16 : vector<1x128xf32> to vector<16x128xf32>
      %18 = arith.subf %12, %17 : vector<16x128xf32>
      %19 = arith.mulf %18, %18 : vector<16x128xf32>
      %cst_14 = arith.constant dense<0.000000e+00> : vector<128xf32>
      %20 = vector.multi_reduction <add>, %19, %cst_14 [0] : vector<16x128xf32> to vector<128xf32>
      %21 = vector.shape_cast %20 : vector<128xf32> to vector<1x128xf32>
      %cst_15 = arith.constant 6.250000e-02 : f32
      %22 = vector.broadcast %cst_15 : f32 to vector<1x128xf32>
      %23 = arith.mulf %21, %22 : vector<1x128xf32>
      %c0_16 = arith.constant 0 : index
      %c0_17 = arith.constant 0 : index
      %24 = vector.load %arg4[%c0_16, %c0_17] : memref<1x128xf32, #tpu.memory_space<vmem>>, vector<1x128xf32>
      %cst_18 = arith.constant 9.99999974E-6 : f32
      %25 = vector.broadcast %cst_18 : f32 to vector<1x128xf32>
      %26 = arith.addf %23, %25 : vector<1x128xf32>
      %27 = math.rsqrt %26 : vector<1x128xf32>
      %28 = arith.mulf %24, %27 : vector<1x128xf32>
      %29 = vector.broadcast %28 : vector<1x128xf32> to vector<16x128xf32>
      %30 = arith.mulf %18, %29 : vector<16x128xf32>
      %c0_19 = arith.constant 0 : index
      %c0_20 = arith.constant 0 : index
      %31 = vector.load %arg5[%c0_19, %c0_20] : memref<1x128xf32, #tpu.memory_space<vmem>>, vector<1x128xf32>
      %32 = vector.broadcast %31 : vector<1x128xf32> to vector<16x128xf32>
      %33 = arith.addf %30, %32 : vector<16x128xf32>
      %cst_21 = arith.constant 0.000000e+00 : f32
      %34 = vector.broadcast %cst_21 : f32 to vector<16x128xf32>
      %35 = arith.maximumf %33, %34 : vector<16x128xf32>
      %c0_22 = arith.constant 0 : index
      %c0_23 = arith.constant 0 : index
      %36 = vector.load %arg6[%c0_22, %c0_23] : memref<16x128xf32, #tpu.memory_space<vmem>>, vector<16x128xf32>
      tpu.vector_store %arg6[%c0_22, %c0_23], %35 {strides = array<i32>} : memref<16x128xf32, #tpu.memory_space<vmem>>, vector<16x128xf32>,
    } else {
    }
    return
  }
  func.func @transform_0(%arg0: i32, %arg1: i32) -> (i32, i32) {
    %c0_i32 = arith.constant 0 : i32
    %c0_i32_0 = arith.constant 0 : i32
    return %c0_i32, %arg1 : i32, i32
  }
  func.func @transform_1(%arg0: i32, %arg1: i32) -> (i32, i32) {
    %c0_i32 = arith.constant 0 : i32
    return %arg1, %arg0 : i32, i32
  }
  func.func @transform_2(%arg0: i32, %arg1: i32) -> (i32, i32) {
    %c0_i32 = arith.constant 0 : i32
    %c0_i32_0 = arith.constant 0 : i32
    return %c0_i32, %arg0 : i32, i32
  }
  func.func @transform_3(%arg0: i32, %arg1: i32) -> (i32, i32) {
    %c0_i32 = arith.constant 0 : i32
    %c0_i32_0 = arith.constant 0 : i32
    return %c0_i32, %arg0 : i32, i32
  }
  func.func @transform_4(%arg0: i32, %arg1: i32) -> (i32, i32) {
    %c0_i32 = arith.constant 0 : i32
    %c0_i32_0 = arith.constant 0 : i32
    return %c0_i32, %arg0 : i32, i32
  }
}

</mosaic_0001>

<bundles_post_ra>
// kernel: tpu_custom_call.1
= control target key start
LH: loop header
LB: loop body
LE: loop exit
PB: predicated region body
PF: predicated region fallthrough
CT: control target
= control target key end

     0   :  { %s1140_s0 = inlined_call_operand.hbm [shape: bf16[16,128], index: 0, kind: input, shape index: {}]   ;;  %s1141_s1 = inlined_call_operand.hbm [shape: bf16[128,256], index: 1, kind: input, shape index: {}]   ;;  %s1142_s2 = inlined_call_operand.hbm [shape: f32[1,256], index: 2, kind: input, shape index: {}]   ;;  %s1143_s3 = inlined_call_operand.vmem [shape: f32[1,256], index: 3, kind: input, shape index: {}]   ;;  %s1144_s4 = inlined_call_operand.hbm [shape: f32[16,256], index: 4, kind: output, shape index: {}]  }
   0x1   :  { %1146 = sst [smem:[#allocation13_spill]] %s1140_s0 }
   0x2   :  { %9 = vsyncpa [#allocation4], 0 }
   0x3   :  { %10 = vsyncpa [#allocation7], 0 }
   0x4   :  { %12 = vsyncpa [#allocation7 + $0x1], 0 }
   0x5   :  { %13 = vsyncpa [#allocation5], 0 }
   0x6   :  { %15 = vsyncpa [#allocation5 + $0x1], 0  ;;  %s950_s15 = smov 0   ;;  %s952_s16 = smov 0  }
   0x7   :  { %s954_s17 = smov 0   ;;  %s956_s18 = smov 0  }
   0x8   :  { %s958_s19 = smov 0   ;;  %s960_s20 = smov 0  }
   0x9 LB: > { %s33_s21 = sadd.s32 1, %s912_s19  ;;  %s68_s22 = sadd.s32 1, %s904_s17  ;;  %s916_s20 = sphi %s960_s20, %s21_s20   ;;  %s912_s19 = sphi %s958_s19, %s1159_s19   ;;  %s908_s18 = sphi %s956_s18, %s1158_s18   ;;  %s904_s17 = sphi %s954_s17, %s1157_s17   ;;  %s900_s16 = sphi %s952_s16, %s1156_s16   ;;  %s896_s15 = sphi %s950_s15, %s1155_s15  }
   0xa   : > { %p35_p0 = scmp.ge.s32.totalorder %s33_s21, 2  ;;  %p75_p1 = scmp.ne.s32.totalorder %s904_s17, %s900_s16 }
   0xb   : > { %p76_p2 = scmp.eq.s32.totalorder %s916_s20, 0  ;;  %p597_p4 = scmp.ge.s32.totalorder %s916_s20, 2 }
   0xc   : > { %s1161_s21 = smov (%p35_p0, %s33_s21), 0  ;;  %p679_p6 = scmp.lt.s32.totalorder %s916_s20, 2 }
   0xd   : > { %p990_p3 = por %p76_p2, %p75_p1  ;;  %s64_s24 = ssub.s32 %s912_s19, %s1161_s21 }
   0xe   : > { %p66_p5 = scmp.eq.s32.totalorder %s64_s24, 0  ;;  %s199_s25 = sand.u32 1, %s916_s20  }
   0xf   : > { %s201_s26 = sand.u32 1, %s904_s17   ;;  %s599_s29 = sshll.u32 %s912_s19, 2 }
  0x10   : > { %s1001_s27 = scalar_select %p66_p5, %s904_s17, %s68_s22  }
  0x11   : > { %s598_s28 = sshll.u32 %s201_s26, 6  ;;  %s210_s6 = scalar_lea.hbm %s1141_s1, %s599_s29 }
  0x12   : > { %s203_s7 = scalar_lea.vmem [#allocation6], %s598_s28  ;;  %s211_s9 = sshll.u32 %s210_s6, 4  ;;  %s212_s9 = int_to_ptr.hbm [resolvable:$true] %s211_s9 }
  0x13   : > { %s213_s8 = sshll.u32 %s203_s7, 4  ;;  %p1011_p7 = pnand %p679_p6, %p990_p3  ;;  %s214_s8 = int_to_ptr.vmem [resolvable:$true] %s213_s8 }
  0x14   : > { %s1015_s11 = scalar_lea.sflag [#allocation7], %s199_s25  ;;  %s918_s12 = smov 128  }
  0x15   : > { %s1145_s13 = smov 64   ;;  %s920_s14 = smov 4  }
  0x16   : > { %670 = dma.hbm_to_vmem [thread:$0]  (!%p1011_p7), %s212_s9, 1024, %s214_s8, %s1015_s11, %s918_s12, %s1145_s13, %s920_s14  }
  0x17   : > { %s1023_s22 = sadd.s32 4294967295, %s916_s20   ;;  %s594_s23 = sadd.s32 4294967294, %s916_s20  }
  0x18   : > { %p81_p8 = scmp.ne.s32.totalorder %s900_s16, %s896_s15  ;;  %p82_p9 = scmp.eq.s32.totalorder %s1023_s22, 0 }
  0x19   : > { %p157_p10 = scmp.eq.s32.totalorder %s1023_s22, 1  ;;  %p163_p11 = scmp.eq.s32.totalorder %s594_s23, 1 }
  0x1a   : > { %p1032_p12 = por %p82_p9, %p81_p8  ;;  %p595_p13 = scmp.ge.s32.totalorder %s916_s20, 1 }
  0x1b   : > { %p1040_p0 = por %p157_p10, %p75_p1  ;;  %p1044_p2 = por %p163_p11, %p81_p8 }
  0x1c   : > { %p170_p3 = scmp.lt.s32.totalorder %s916_s20, 3  ;;  %s1152_s0 = sld [smem:[#allocation13_spill]] }
  0x1d   : > { %s921_s7 = smov [#allocation3]   ;;  %s229_s23 = scalar_lea.hbm %s1142_s2, %s912_s19 }
  0x1e   : > { %p1052_p5 = pnand %p595_p13, %p170_p3  ;;  %s185_s8 = sshll.u32 %s921_s7, 4  ;;  %s186_s8 = int_to_ptr.vmem [resolvable:$true] %s185_s8 }
  0x1f   : > { %s226_s29 = scalar_lea.vmem [#allocation8], %s201_s26  ;;  %s231_s13 = sshll.u32 %s229_s23, 4  ;;  %s232_s13 = int_to_ptr.hbm [resolvable:$true] %s231_s13 }
  0x20   : > { %p663_p1 = pneg %p1052_p5  ;;  %s233_s30 = sshll.u32 %s226_s29, 4  ;;  %s234_s30 = int_to_ptr.vmem [resolvable:$true] %s233_s30 }
  0x21   : > { %673 = dma.hbm_to_vmem [thread:$0]  (!%p1011_p7), %s232_s13, 16, %s234_s30, %s1015_s11  }
  0x22   : > { %s183_s5 = sshll.u32 %s1152_s0, 4  ;;  %p664_p6 = pnand %p663_p1, %p82_p9  ;;  %s184_s5 = int_to_ptr.hbm [resolvable:$true] %s183_s5 }
  0x23   : > { %s1154_s0 = smov 64   ;;  %248 = sbr.rel (%p1052_p5) target bundleno = 283 (0x11b), region = 36 }
  0x24   : > { %666 = dma.hbm_to_vmem [thread:$0]  (!%p664_p6), %s184_s5, 128, %s186_s8, [#allocation4], %s1154_s0, %s1154_s0, %s920_s14  }
  0x28   : > { %883 = dma.done.wait (%p82_p9), [#allocation4], 128  }
  0x29   : > { %885 = vsyncadd (%p82_p9), [#allocation4], 4294967168  ;;  %s255_s26 = sand.u32 1, %s1023_s22   ;;  %s1080_s7 = sand.u32 1, %s900_s16  }
  0x2a   : > { %s602_s9 = sshll.u32 %s1080_s7, 6  ;;  %s256_s0 = scalar_lea.sflag [#allocation7], %s255_s26 }
  0x2b   : > { %s259_s10 = scalar_lea.vmem [#allocation6], %s602_s9 }
  0x2c   : > { %887 = dma.done.wait (%p1032_p12), %s256_s0, 1040  }
  0x2d   : > { %889 = vsyncadd (%p1032_p12), %s256_s0, 4294966256  ;;  %v652_v0 = vld [vmem:[%s259_s10 + $0x38] sm:$0xff]  ;;  %v651_v1 = vld [vmem:[%s259_s10 + $0x30] sm:$0xff]  ;;  %p302_p7 = scmp.lt.s32.totalorder %s908_s18, 1  ;;  %s268_s24 = scalar_lea.vmem [#allocation8], %s1080_s7 }
  0x2e   : > { %385 = vmatpush.bf16.msra.mxu0 %v652_v0  ;;  %v650_v2 = vld [vmem:[%s259_s10 + $0x28] sm:$0xff]  ;;  %v649_v3 = vld [vmem:[%s259_s10 + $0x20] sm:$0xff]  ;;  %v648_v4 = vld [vmem:[%s259_s10 + $0x18] sm:$0xff]  ;;  %s603_s5 = sshll.u32 %s1080_s7, 4  ;;  %s641_s6 = sshll.u32 %s908_s18, 3 }
  0x2f   : > { %v647_v5 = vld [vmem:[%s259_s10 + $0x10] sm:$0xff]  ;;  %v646_v6 = vld [vmem:[%s259_s10 + $0x8] sm:$0xff]  ;;  %v645_v7 = vld [vmem:[%s259_s10] sm:$0xff]  ;;  %s1089_s11 = scalar_select %p302_p7, %s908_s18, 1 }
  0x30   : > { %v644_v8 = vld [vmem:[#allocation3] sm:$0xff]  ;;  %s467_s30 = scalar_lea.hbm %s1144_s4, %s641_s6  ;;  %s300_s26 = scalar_lea.vmem [#allocation9], %s603_s5 }
  0x31   : > { %s304_s22 = scalar_lea.vmem %s1143_s3, %s1089_s11  ;;  %v428_v37 = vld [vmem:[%s268_s24] sm:$0x1]  ;;  %s468_s9 = sshll.u32 %s300_s26, 4  ;;  %s469_s9 = int_to_ptr.vmem [resolvable:$true] %s468_s9 }
  0x32   : > { %386 = vmatpush.bf16.msra.mxu0 %v651_v1  ;;  %v737_v42 = vld [vmem:[%s304_s22] ss:$0 sm:$0xff]  ;;  %s470_s0 = sshll.u32 %s467_s30, 4  ;;  %s457_s18 = scalar_lea.sflag [#allocation5], %s1080_s7  ;;  %s471_s0 = int_to_ptr.hbm [resolvable:$true] %s470_s0 }
  0x33   : > { %s844_s10 = sshra.s32 %s471_s0, 4  ;;  %s850_s22 = scalar_lea.hbm %s1144_s4, 32  ;;  %s845_s10 = int_to_ptr.hbm [resolvable:$true] %s844_s10 }
  0x34   : > { %s846_s11 = scalar_lea.hbm %s845_s10, 16  ;;  %p851_p11 = scmp.lt.s32.totalorder %s845_s10, %s1144_s4 }
  0x35   : > { %p847_p8 = scmp.ne.s32.totalorder %s845_s10, %s846_s11  ;;  %p852_p12 = scmp.lt.s32.totalorder %s850_s22, %s846_s11 }
  0x36   : > { %387 = vmatpush.bf16.msra.mxu0 %v650_v2 }
  0x37   : > { %p848_p9 = pnand %p847_p8, %p1040_p0  ;;  %p853_p13 = por %p852_p12, %p851_p11 }
  0x39   : > { %p849_p10 = pneg %p848_p9 }
  0x3a   : > { %388 = vmatpush.bf16.msra.mxu0 %v649_v3 }
  0x3b   : > { %p854_p3 = pnand %p853_p13, %p849_p10 }
  0x3e   : > { %389 = vmatpush.bf16.msra.mxu0 %v648_v4 }
  0x42   : > { %390 = vmatpush.bf16.msra.mxu0 %v647_v5 }
  0x46   : > { %391 = vmatpush.bf16.msra.mxu0 %v646_v6 }
  0x4a   : > { %392 = vmatpush.bf16.msra.mxu0 %v645_v7 }
  0x4d   : > { %393 = vmatmul.bf16.vlgmr.msra.gmra.mxu0 %v644_v8 }
  0xca   : > { %v394_v9 = vpop.f32.mrf.mxu0 }
  0xd2   : > { %v396_v10 = vpop.f32.mrf.mxu0 }
  0xd3   : > { %v408_v11 = vadd.f32 %v396_v10, %v394_v9 }
  0xd5   : > { %v409_v12 = vrot.slane %v408_v11, 4 }
  0xd7   : > { %v410_v13 = vadd.f32 %v409_v12, %v408_v11 }
  0xd9   : > { %v411_v14 = vrot.slane %v410_v13, 2 }
  0xdb   : > { %v412_v15 = vadd.f32 %v411_v14, %v410_v13 }
  0xdd   : > { %v413_v16 = vrot.slane %v412_v15, 1 }
  0xdf   : > { %v414_v17 = vadd.f32 %v413_v16, %v412_v15 }
  0xe1   : > { %v415_v18 = vmul.f32 0.0625, %v414_v17 }
  0xe3   : > { %v416_v19 = vsub.f32 %v394_v9, %v415_v18  ;;  %v417_v20 = vsub.f32 %v396_v10, %v415_v18 }
  0xe5   : > { %v418_v21 = vmul.f32 %v416_v19, %v416_v19  ;;  %v419_v22 = vmul.f32 %v417_v20, %v417_v20 }
  0xe7   : > { %v420_v23 = vadd.f32 %v419_v22, %v418_v21 }
  0xe9   : > { %v421_v24 = vrot.slane %v420_v23, 4 }
  0xeb   : > { %v422_v25 = vadd.f32 %v421_v24, %v420_v23 }
  0xed   : > { %v423_v26 = vrot.slane %v422_v25, 2 }
  0xef   : > { %v424_v27 = vadd.f32 %v423_v26, %v422_v25 }
  0xf1   : > { %v425_v28 = vrot.slane %v424_v27, 1 }
  0xf3   : > { %v426_v29 = vadd.f32 %v425_v28, %v424_v27 }
  0xf5   : > { %v427_v30 = vmul.f32 0.0625, %v426_v29 }
  0xf7   : > { %v429_v31 = vadd.f32 1e-05, %v427_v30 }
  0xf9   : > { %738 = vrsqrt.f32 %v429_v31  ;;  %vm436_vm1 = vweird.f32 %v429_v31 }
  0xff   : > { %v739_v32 = vpop.eup %738 }
 0x100   : > { %v431_v33 = vmul.f32 %v739_v32, %v429_v31  ;;  %vm437_vm0 = vweird.f32 %v739_v32 }
 0x101   : > { %vm438_vm2 = vmor %vm436_vm1, %vm437_vm0 }
 0x102   : > { %v432_v34 = vmul.f32 %v739_v32, %v431_v33 }
 0x104   : > { %v433_v35 = vmul.f32 0.5, %v432_v34 }
 0x106   : > { %v434_v36 = vsub.f32 1.5, %v433_v35 }
 0x108   : > { %v435_v38 = vmul.f32 %v739_v32, %v434_v36 }
 0x10a   : > { %v439_v39 = vsel %vm438_vm2, %v739_v32, %v435_v38 }
 0x10b   : > { %v440_v40 = vmul.f32 %v439_v39, %v428_v37 }
 0x10d   : > { %v442_v41 = vperm.slane %v440_v40, 0 }
 0x10f   : > { %v444_v43 = vmul.f32 %v442_v41, %v416_v19  ;;  %v445_v44 = vmul.f32 %v442_v41, %v417_v20 }
 0x111   : > { %v450_v45 = vadd.f32 %v737_v42, %v444_v43  ;;  %v451_v46 = vadd.f32 %v737_v42, %v445_v44 }
 0x113   : > { %v452_v47 = vmax.f32 %v450_v45, 0.0  ;;  %v453_v48 = vmax.f32 %v451_v46, 0.0 }
 0x115   : > { %454 = vst [vmem:[%s300_s26] sm:$0xff] %v452_v47 }
 0x116   : > { %455 = vst [vmem:[%s300_s26 + $0x8] sm:$0xff] %v453_v48 }
 0x117   : > { %857 = shalt.err (!%p854_p3)
}
 0x118   : > { %s922_s7 = smov 128   ;;  %s923_s6 = smov 256  }
 0x119   : > { %s924_s8 = smov 8  }
 0x11a   : > { %661 = dma.vmem_to_hbm [thread:$0]  (%p1040_p0), %s469_s9, 256, %s471_s0, %s457_s18, %s922_s7, %s923_s6, %s924_s8  }
 0x11b PF: > { %s485_s12 = sand.u32 1, %s896_s15   ;;  %p675_p5 = pnand %p597_p4, %p1044_p2 }
 0x11c   : > { %s486_s23 = scalar_lea.sflag [#allocation5], %s485_s12 }
 0x11d   : > { %p676_p1 = pneg %p675_p5 }
 0x11f   : > { %891 = dma.done.wait (%p676_p1), %s486_s23, 256  }
 0x120   : > { %893 = vsyncadd (%p676_p1), %s486_s23, 4294967040  ;;  %s21_s20 = sadd.s32 1, %s916_s20   ;;  %s1155_s15 = smov %s900_s16 }
 0x121   : > { %p18_p6 = scmp.ge.s32.totalorder %s21_s20, 4   ;;  %s1156_s16 = smov %s904_s17 }
 0x122   : > { %s1157_s17 = smov %s1001_s27  ;;  %s1158_s18 = smov %s912_s19 }
 0x123   : > { %s1159_s19 = smov %s1161_s21  ;;  %20 = sbr.rel (!%p18_p6) target bundleno = 9 (0x9), region = 109 }
 0x128   :  { %492 = vsyncpa [#allocation4], 1 }
 0x129   :  { %494 = vsyncpa [#allocation4 + $0x1], 1 }
 0x12a   :  { %495 = vsyncpa [#allocation7], 1 }
 0x12b   :  { %497 = vsyncpa [#allocation7 + $0x1], 1 }
 0x12c   :  { %498 = vsyncpa [#allocation5], 1 }
 0x12d   :  { %500 = vsyncpa [#allocation5 + $0x1], 1 }

// kernel: tpu_custom_call.1
= control target key start
LH: loop header
LB: loop body
LE: loop exit
PB: predicated region body
PF: predicated region fallthrough
CT: control target
= control target key end

     0   :  { %s1140_s0 = inlined_call_operand.hbm [shape: bf16[16,128], index: 0, kind: input, shape index: {}]   ;;  %s1141_s1 = inlined_call_operand.hbm [shape: bf16[128,256], index: 1, kind: input, shape index: {}]   ;;  %s1142_s2 = inlined_call_operand.hbm [shape: f32[1,256], index: 2, kind: input, shape index: {}]   ;;  %s1143_s3 = inlined_call_operand.vmem [shape: f32[1,256], index: 3, kind: input, shape index: {}]   ;;  %s1144_s4 = inlined_call_operand.hbm [shape: f32[16,256], index: 4, kind: output, shape index: {}]  }
   0x1   :  { %1146 = sst [smem:[#allocation13_spill]] %s1140_s0 }
   0x2   :  { %9 = vsyncpa [#allocation4], 0 }
   0x3   :  { %10 = vsyncpa [#allocation7], 0 }
   0x4   :  { %12 = vsyncpa [#allocation7 + $0x1], 0 }
   0x5   :  { %13 = vsyncpa [#allocation5], 0 }
   0x6   :  { %15 = vsyncpa [#allocation5 + $0x1], 0  ;;  %s950_s15 = smov 0   ;;  %s952_s16 = smov 0  }
   0x7   :  { %s954_s17 = smov 0   ;;  %s956_s18 = smov 0  }
   0x8   :  { %s958_s19 = smov 0   ;;  %s960_s20 = smov 0  }
   0x9 LB: > { %s33_s21 = sadd.s32 1, %s912_s19  ;;  %s68_s22 = sadd.s32 1, %s904_s17  ;;  %s916_s20 = sphi %s960_s20, %s21_s20   ;;  %s912_s19 = sphi %s958_s19, %s1159_s19   ;;  %s908_s18 = sphi %s956_s18, %s1158_s18   ;;  %s904_s17 = sphi %s954_s17, %s1157_s17   ;;  %s900_s16 = sphi %s952_s16, %s1156_s16   ;;  %s896_s15 = sphi %s950_s15, %s1155_s15  }
   0xa   : > { %p35_p0 = scmp.ge.s32.totalorder %s33_s21, 2  ;;  %p75_p1 = scmp.ne.s32.totalorder %s904_s17, %s900_s16 }
   0xb   : > { %p76_p2 = scmp.eq.s32.totalorder %s916_s20, 0  ;;  %p597_p4 = scmp.ge.s32.totalorder %s916_s20, 2 }
   0xc   : > { %s1161_s21 = smov (%p35_p0, %s33_s21), 0  ;;  %p679_p6 = scmp.lt.s32.totalorder %s916_s20, 2 }
   0xd   : > { %p990_p3 = por %p76_p2, %p75_p1  ;;  %s64_s24 = ssub.s32 %s912_s19, %s1161_s21 }
   0xe   : > { %p66_p5 = scmp.eq.s32.totalorder %s64_s24, 0  ;;  %s199_s25 = sand.u32 1, %s916_s20  }
   0xf   : > { %s201_s26 = sand.u32 1, %s904_s17   ;;  %s599_s29 = sshll.u32 %s912_s19, 2 }
  0x10   : > { %s1001_s27 = scalar_select %p66_p5, %s904_s17, %s68_s22  }
  0x11   : > { %s598_s28 = sshll.u32 %s201_s26, 6  ;;  %s210_s6 = scalar_lea.hbm %s1141_s1, %s599_s29 }
  0x12   : > { %s203_s7 = scalar_lea.vmem [#allocation6], %s598_s28  ;;  %s211_s9 = sshll.u32 %s210_s6, 4  ;;  %s212_s9 = int_to_ptr.hbm [resolvable:$true] %s211_s9 }
  0x13   : > { %s213_s8 = sshll.u32 %s203_s7, 4  ;;  %p1011_p7 = pnand %p679_p6, %p990_p3  ;;  %s214_s8 = int_to_ptr.vmem [resolvable:$true] %s213_s8 }
  0x14   : > { %s1015_s11 = scalar_lea.sflag [#allocation7], %s199_s25  ;;  %s918_s12 = smov 128  }
  0x15   : > { %s1145_s13 = smov 64   ;;  %s920_s14 = smov 4  }
  0x16   : > { %670 = dma.hbm_to_vmem [thread:$0]  (!%p1011_p7), %s212_s9, 1024, %s214_s8, %s1015_s11, %s918_s12, %s1145_s13, %s920_s14  }
  0x17   : > { %s1023_s22 = sadd.s32 4294967295, %s916_s20   ;;  %s594_s23 = sadd.s32 4294967294, %s916_s20  }
  0x18   : > { %p81_p8 = scmp.ne.s32.totalorder %s900_s16, %s896_s15  ;;  %p82_p9 = scmp.eq.s32.totalorder %s1023_s22, 0 }
  0x19   : > { %p157_p10 = scmp.eq.s32.totalorder %s1023_s22, 1  ;;  %p163_p11 = scmp.eq.s32.totalorder %s594_s23, 1 }
  0x1a   : > { %p1032_p12 = por %p82_p9, %p81_p8  ;;  %p595_p13 = scmp.ge.s32.totalorder %s916_s20, 1 }
  0x1b   : > { %p1040_p0 = por %p157_p10, %p75_p1  ;;  %p1044_p2 = por %p163_p11, %p81_p8 }
  0x1c   : > { %p170_p3 = scmp.lt.s32.totalorder %s916_s20, 3  ;;  %s1152_s0 = sld [smem:[#allocation13_spill]] }
  0x1d   : > { %s921_s7 = smov [#allocation3]   ;;  %s229_s23 = scalar_lea.hbm %s1142_s2, %s912_s19 }
  0x1e   : > { %p1052_p5 = pnand %p595_p13, %p170_p3  ;;  %s185_s8 = sshll.u32 %s921_s7, 4  ;;  %s186_s8 = int_to_ptr.vmem [resolvable:$true] %s185_s8 }
  0x1f   : > { %s226_s29 = scalar_lea.vmem [#allocation8], %s201_s26  ;;  %s231_s13 = sshll.u32 %s229_s23, 4  ;;  %s232_s13 = int_to_ptr.hbm [resolvable:$true] %s231_s13 }
  0x20   : > { %p663_p1 = pneg %p1052_p5  ;;  %s233_s30 = sshll.u32 %s226_s29, 4  ;;  %s234_s30 = int_to_ptr.vmem [resolvable:$true] %s233_s30 }
  0x21   : > { %673 = dma.hbm_to_vmem [thread:$0]  (!%p1011_p7), %s232_s13, 16, %s234_s30, %s1015_s11  }
  0x22   : > { %s183_s5 = sshll.u32 %s1152_s0, 4  ;;  %p664_p6 = pnand %p663_p1, %p82_p9  ;;  %s184_s5 = int_to_ptr.hbm [resolvable:$true] %s183_s5 }
  0x23   : > { %s1154_s0 = smov 64   ;;  %248 = sbr.rel (%p1052_p5) target bundleno = 283 (0x11b), region = 36 }
  0x24   : > { %666 = dma.hbm_to_vmem [thread:$0]  (!%p664_p6), %s184_s5, 128, %s186_s8, [#allocation4], %s1154_s0, %s1154_s0, %s920_s14  }
  0x28   : > { %883 = dma.done.wait (%p82_p9), [#allocation4], 128  }
  0x29   : > { %885 = vsyncadd (%p82_p9), [#allocation4], 4294967168  ;;  %s255_s26 = sand.u32 1, %s1023_s22   ;;  %s1080_s7 = sand.u32 1, %s900_s16  }
  0x2a   : > { %s602_s9 = sshll.u32 %s1080_s7, 6  ;;  %s256_s0 = scalar_lea.sflag [#allocation7], %s255_s26 }
  0x2b   : > { %s259_s10 = scalar_lea.vmem [#allocation6], %s602_s9 }
  0x2c   : > { %887 = dma.done.wait (%p1032_p12), %s256_s0, 1040  }
  0x2d   : > { %889 = vsyncadd (%p1032_p12), %s256_s0, 4294966256  ;;  %v652_v0 = vld [vmem:[%s259_s10 + $0x38] sm:$0xff]  ;;  %v651_v1 = vld [vmem:[%s259_s10 + $0x30] sm:$0xff]  ;;  %p302_p7 = scmp.lt.s32.totalorder %s908_s18, 1  ;;  %s268_s24 = scalar_lea.vmem [#allocation8], %s1080_s7 }
  0x2e   : > { %385 = vmatpush.bf16.msra.mxu0 %v652_v0  ;;  %v650_v2 = vld [vmem:[%s259_s10 + $0x28] sm:$0xff]  ;;  %v649_v3 = vld [vmem:[%s259_s10 + $0x20] sm:$0xff]  ;;  %v648_v4 = vld [vmem:[%s259_s10 + $0x18] sm:$0xff]  ;;  %s603_s5 = sshll.u32 %s1080_s7, 4  ;;  %s641_s6 = sshll.u32 %s908_s18, 3 }
  0x2f   : > { %v647_v5 = vld [vmem:[%s259_s10 + $0x10] sm:$0xff]  ;;  %v646_v6 = vld [vmem:[%s259_s10 + $0x8] sm:$0xff]  ;;  %v645_v7 = vld [vmem:[%s259_s10] sm:$0xff]  ;;  %s1089_s11 = scalar_select %p302_p7, %s908_s18, 1 }
  0x30   : > { %v644_v8 = vld [vmem:[#allocation3] sm:$0xff]  ;;  %s467_s30 = scalar_lea.hbm %s1144_s4, %s641_s6  ;;  %s300_s26 = scalar_lea.vmem [#allocation9], %s603_s5 }
  0x31   : > { %s304_s22 = scalar_lea.vmem %s1143_s3, %s1089_s11  ;;  %v428_v37 = vld [vmem:[%s268_s24] sm:$0x1]  ;;  %s468_s9 = sshll.u32 %s300_s26, 4  ;;  %s469_s9 = int_to_ptr.vmem [resolvable:$true] %s468_s9 }
  0x32   : > { %386 = vmatpush.bf16.msra.mxu0 %v651_v1  ;;  %v737_v42 = vld [vmem:[%s304_s22] ss:$0 sm:$0xff]  ;;  %s470_s0 = sshll.u32 %s467_s30, 4  ;;  %s457_s18 = scalar_lea.sflag [#allocation5], %s1080_s7  ;;  %s471_s0 = int_to_ptr.hbm [resolvable:$true] %s470_s0 }
  0x33   : > { %s844_s10 = sshra.s32 %s471_s0, 4  ;;  %s850_s22 = scalar_lea.hbm %s1144_s4, 32  ;;  %s845_s10 = int_to_ptr.hbm [resolvable:$true] %s844_s10 }
  0x34   : > { %s846_s11 = scalar_lea.hbm %s845_s10, 16  ;;  %p851_p11 = scmp.lt.s32.totalorder %s845_s10, %s1144_s4 }
  0x35   : > { %p847_p8 = scmp.ne.s32.totalorder %s845_s10, %s846_s11  ;;  %p852_p12 = scmp.lt.s32.totalorder %s850_s22, %s846_s11 }
  0x36   : > { %387 = vmatpush.bf16.msra.mxu0 %v650_v2 }
  0x37   : > { %p848_p9 = pnand %p847_p8, %p1040_p0  ;;  %p853_p13 = por %p852_p12, %p851_p11 }
  0x39   : > { %p849_p10 = pneg %p848_p9 }
  0x3a   : > { %388 = vmatpush.bf16.msra.mxu0 %v649_v3 }
  0x3b   : > { %p854_p3 = pnand %p853_p13, %p849_p10 }
  0x3e   : > { %389 = vmatpush.bf16.msra.mxu0 %v648_v4 }
  0x42   : > { %390 = vmatpush.bf16.msra.mxu0 %v647_v5 }
  0x46   : > { %391 = vmatpush.bf16.msra.mxu0 %v646_v6 }
  0x4a   : > { %392 = vmatpush.bf16.msra.mxu0 %v645_v7 }
  0x4d   : > { %393 = vmatmul.bf16.vlgmr.msra.gmra.mxu0 %v644_v8 }
  0xca   : > { %v394_v9 = vpop.f32.mrf.mxu0 }
  0xd2   : > { %v396_v10 = vpop.f32.mrf.mxu0 }
  0xd3   : > { %v408_v11 = vadd.f32 %v396_v10, %v394_v9 }
  0xd5   : > { %v409_v12 = vrot.slane %v408_v11, 4 }
  0xd7   : > { %v410_v13 = vadd.f32 %v409_v12, %v408_v11 }
  0xd9   : > { %v411_v14 = vrot.slane %v410_v13, 2 }
  0xdb   : > { %v412_v15 = vadd.f32 %v411_v14, %v410_v13 }
  0xdd   : > { %v413_v16 = vrot.slane %v412_v15, 1 }
  0xdf   : > { %v414_v17 = vadd.f32 %v413_v16, %v412_v15 }
  0xe1   : > { %v415_v18 = vmul.f32 0.0625, %v414_v17 }
  0xe3   : > { %v416_v19 = vsub.f32 %v394_v9, %v415_v18  ;;  %v417_v20 = vsub.f32 %v396_v10, %v415_v18 }
  0xe5   : > { %v418_v21 = vmul.f32 %v416_v19, %v416_v19  ;;  %v419_v22 = vmul.f32 %v417_v20, %v417_v20 }
  0xe7   : > { %v420_v23 = vadd.f32 %v419_v22, %v418_v21 }
  0xe9   : > { %v421_v24 = vrot.slane %v420_v23, 4 }
  0xeb   : > { %v422_v25 = vadd.f32 %v421_v24, %v420_v23 }
  0xed   : > { %v423_v26 = vrot.slane %v422_v25, 2 }
  0xef   : > { %v424_v27 = vadd.f32 %v423_v26, %v422_v25 }
  0xf1   : > { %v425_v28 = vrot.slane %v424_v27, 1 }
  0xf3   : > { %v426_v29 = vadd.f32 %v425_v28, %v424_v27 }
  0xf5   : > { %v427_v30 = vmul.f32 0.0625, %v426_v29 }
  0xf7   : > { %v429_v31 = vadd.f32 1e-05, %v427_v30 }
  0xf9   : > { %738 = vrsqrt.f32 %v429_v31  ;;  %vm436_vm1 = vweird.f32 %v429_v31 }
  0xff   : > { %v739_v32 = vpop.eup %738 }
 0x100   : > { %v431_v33 = vmul.f32 %v739_v32, %v429_v31  ;;  %vm437_vm0 = vweird.f32 %v739_v32 }
 0x101   : > { %vm438_vm2 = vmor %vm436_vm1, %vm437_vm0 }
 0x102   : > { %v432_v34 = vmul.f32 %v739_v32, %v431_v33 }
 0x104   : > { %v433_v35 = vmul.f32 0.5, %v432_v34 }
 0x106   : > { %v434_v36 = vsub.f32 1.5, %v433_v35 }
 0x108   : > { %v435_v38 = vmul.f32 %v739_v32, %v434_v36 }
 0x10a   : > { %v439_v39 = vsel %vm438_vm2, %v739_v32, %v435_v38 }
 0x10b   : > { %v440_v40 = vmul.f32 %v439_v39, %v428_v37 }
 0x10d   : > { %v442_v41 = vperm.slane %v440_v40, 0 }
 0x10f   : > { %v444_v43 = vmul.f32 %v442_v41, %v416_v19  ;;  %v445_v44 = vmul.f32 %v442_v41, %v417_v20 }
 0x111   : > { %v450_v45 = vadd.f32 %v737_v42, %v444_v43  ;;  %v451_v46 = vadd.f32 %v737_v42, %v445_v44 }
 0x113   : > { %v452_v47 = vmax.f32 %v450_v45, 0.0  ;;  %v453_v48 = vmax.f32 %v451_v46, 0.0 }
 0x115   : > { %454 = vst [vmem:[%s300_s26] sm:$0xff] %v452_v47 }
 0x116   : > { %455 = vst [vmem:[%s300_s26 + $0x8] sm:$0xff] %v453_v48 }
 0x117   : > { %857 = shalt.err (!%p854_p3)
}
 0x118   : > { %s922_s7 = smov 128   ;;  %s923_s6 = smov 256  }
 0x119   : > { %s924_s8 = smov 8  }
 0x11a   : > { %661 = dma.vmem_to_hbm [thread:$0]  (%p1040_p0), %s469_s9, 256, %s471_s0, %s457_s18, %s922_s7, %s923_s6, %s924_s8  }
 0x11b PF: > { %s485_s12 = sand.u32 1, %s896_s15   ;;  %p675_p5 = pnand %p597_p4, %p1044_p2 }
 0x11c   : > { %s486_s23 = scalar_lea.sflag [#allocation5], %s485_s12 }
 0x11d   : > { %p676_p1 = pneg %p675_p5 }
 0x11f   : > { %891 = dma.done.wait (%p676_p1), %s486_s23, 256  }
 0x120   : > { %893 = vsyncadd (%p676_p1), %s486_s23, 4294967040  ;;  %s21_s20 = sadd.s32 1, %s916_s20   ;;  %s1155_s15 = smov %s900_s16 }
 0x121   : > { %p18_p6 = scmp.ge.s32.totalorder %s21_s20, 4   ;;  %s1156_s16 = smov %s904_s17 }
 0x122   : > { %s1157_s17 = smov %s1001_s27  ;;  %s1158_s18 = smov %s912_s19 }
 0x123   : > { %s1159_s19 = smov %s1161_s21  ;;  %20 = sbr.rel (!%p18_p6) target bundleno = 9 (0x9), region = 109 }
 0x128   :  { %492 = vsyncpa [#allocation4], 1 }
 0x129   :  { %494 = vsyncpa [#allocation4 + $0x1], 1 }
 0x12a   :  { %495 = vsyncpa [#allocation7], 1 }
 0x12b   :  { %497 = vsyncpa [#allocation7 + $0x1], 1 }
 0x12c   :  { %498 = vsyncpa [#allocation5], 1 }
 0x12d   :  { %500 = vsyncpa [#allocation5 + $0x1], 1 }

</bundles_post_ra>
